<compile_context>
chip_gen: v5e
topology: v5e:2x2
jax: 0.10.0
libtpu: 0.0.40
codegen_flags: <defaults>
</compile_context>

<pallas_src>
import functools

import numpy as np
import jax
import jax.numpy as jnp
from jax.experimental import pallas as pl
from jax.experimental.pallas import tpu as pltpu


def mlp_kernel(x_ref, w1_ref, b1_ref, w2_ref, b2_ref, w3_ref, b3_ref, o_ref,
               *, act_dtype, approx_recip):
    def sigmoid(h):
        # exp and reciprocal both route to the EUP slot; keeps VALU slots free.
        return pl.reciprocal(1.0 + jnp.exp(-h), approx=approx_recip)

    # fc1 + sigmoid: MXU operands in native dtype, f32 accumulation.
    x = x_ref[...]
    h1 = jnp.dot(x, w1_ref[...], preferred_element_type=jnp.float32)
    h1 = h1 + b1_ref[...].astype(jnp.float32)
    h1 = sigmoid(h1.astype(act_dtype)).astype(w2_ref.dtype)

    # fc2 + sigmoid
    h2 = jnp.dot(h1, w2_ref[...], preferred_element_type=jnp.float32)
    h2 = h2 + b2_ref[...].astype(jnp.float32)
    h2 = sigmoid(h2.astype(act_dtype)).astype(w3_ref.dtype)

    # fc3 (no activation)
    out = jnp.dot(h2, w3_ref[...], preferred_element_type=jnp.float32)
    out = out + b3_ref[...].astype(jnp.float32)
    o_ref[...] = out.astype(o_ref.dtype)


def _round_up(n, m):
    return ((n + m - 1) // m) * m


def _cdiv(a, b):
    return -(-a // b)


def _pad2(a, rows, cols):
    return jnp.pad(a, ((0, rows - a.shape[0]), (0, cols - a.shape[1])))


def _vmem_capacity_bytes():
    try:
        return int(pltpu.get_tpu_info().vmem_capacity_bytes)
    except Exception:
        pass
    try:
        kind = jax.devices()[0].device_kind.lower()
        if "v7" in kind:
            return 64 * 1024 * 1024
        if any(f"v{g}" in kind for g in (4, 5, 6)):
            return 128 * 1024 * 1024
    except Exception:
        pass
    return 64 * 1024 * 1024  # conservative default


def _chip_generation():
    try:
        kind = jax.devices()[0].device_kind.lower()
        for g in range(9, 1, -1):
            if f"v{g}" in kind:
                return g
    except Exception:
        pass
    return 0  # unknown -> take the conservative (f32 elementwise) path


def mlp_forward(x, params, *, tile_b=None, use_bf16_matmul=False):
    """x: [B, input_size]; params: dict(w1,b1,w2,b2,w3,b3) with weights [in, out]."""
    B, in_dim = x.shape
    hidden = params["w1"].shape[1]
    out_dim = params["w3"].shape[1]

    LANE, SUB = 128, 8
    in_p = _round_up(in_dim, LANE)
    hid_p = _round_up(hidden, LANE)
    out_p = _round_up(out_dim, LANE)

    capacity = _vmem_capacity_bytes()
    gen = _chip_generation()

    # MXU dtype: native param dtype; optionally demote f32 params to bf16.
    w_dtype = params["w1"].dtype
    mxu_dtype = jnp.bfloat16 if (use_bf16_matmul and np.dtype(w_dtype) == np.dtype(jnp.float32)) \
        else w_dtype
    # Elementwise sigmoid dtype: bf16 only on bf16-capable VPU/EUP (v6e+), else f32.
    elem_bf16 = (np.dtype(mxu_dtype) == np.dtype(jnp.bfloat16)) and gen >= 6
    act_dtype = jnp.bfloat16 if elem_bf16 else jnp.float32

    # Batch tile: derive from the number of tiles so padding is minimal, cap by
    # VMEM generation, and keep >= 2 grid steps so both v7x TCs get work.
    if tile_b is None:
        cap = 512 if capacity <= 64 * 1024 * 1024 else 1536
        n_tiles = max(1, _cdiv(B, cap))
        if B >= 2 * SUB:
            n_tiles = max(n_tiles, 2)
        tile_b = _round_up(_cdiv(B, n_tiles), SUB)
    tile_b = max(SUB, _round_up(tile_b, SUB))
    B_p = _round_up(B, tile_b)

    # Zero-pad everything lane-dense. Zero weight rows/cols guarantee that
    # sigmoid(0)=0.5 in padded hidden columns cannot leak into real outputs.
    x_p = _pad2(x, B_p, in_p).astype(mxu_dtype)
    w1 = _pad2(params["w1"], in_p, hid_p).astype(mxu_dtype)
    b1 = _pad2(params["b1"], 1, hid_p)
    w2 = _pad2(params["w2"], hid_p, hid_p).astype(mxu_dtype)
    b2 = _pad2(params["b2"], 1, hid_p)
    w3 = _pad2(params["w3"], hid_p, out_p).astype(mxu_dtype)
    b3 = _pad2(params["b3"], 1, out_p)

    # TODO(synk): add a hidden-dim-tiled accumulator path (P3 pattern) for hidden
    # sizes whose resident weights exceed the per-chip VMEM budget (e.g. 4096 f32 on v7x).

    grid = (B_p // tile_b,)
    out_shape = jax.ShapeDtypeStruct((B_p, out_p), x.dtype)
    kernel = functools.partial(mlp_kernel, act_dtype=act_dtype, approx_recip=elem_bf16)

    mxu_bytes = np.dtype(mxu_dtype).itemsize
    bias_bytes = np.dtype(b1.dtype).itemsize
    out_bytes = np.dtype(x.dtype).itemsize

    def build(single_buffer_weights):
        def resident(shape):
            # Constant block index -> fetched once, resident across batch steps.
            idx = lambda i, _n=len(shape): (0,) * _n
            if single_buffer_weights:
                return pl.BlockSpec(shape, idx, pipeline_mode=pl.Buffered(1))
            return pl.BlockSpec(shape, idx)

        w_buf = 1 if single_buffer_weights else 2
        weight_fp = w_buf * ((in_p * hid_p + hid_p * hid_p + hid_p * out_p) * mxu_bytes
                             + (2 * hid_p + out_p) * bias_bytes)
        io_fp = 2 * tile_b * (in_p * mxu_bytes + out_p * out_bytes)   # double-buffered x/out
        scratch_fp = 4 * tile_b * hid_p * 4 + (2 << 20)               # f32 temps + margin
        needed = weight_fp + io_fp + scratch_fp

        vmem_limit = None
        if needed > 12 * 1024 * 1024:   # v5e default scoped limit is 16 MiB
            vmem_limit = min(int(needed * 1.25) + (2 << 20), capacity - (8 << 20))

        return pl.pallas_call(
            kernel,
            out_shape=out_shape,
            grid_spec=pl.GridSpec(
                grid=grid,
                in_specs=[
                    pl.BlockSpec((tile_b, in_p), lambda i: (i, 0)),   # streamed x tile
                    resident(w1.shape), resident(b1.shape),
                    resident(w2.shape), resident(b2.shape),
                    resident(w3.shape), resident(b3.shape),
                ],
                out_specs=pl.BlockSpec((tile_b, out_p), lambda i: (i, 0)),
            ),
            compiler_params=pltpu.CompilerParams(
                dimension_semantics=("parallel",),
                vmem_limit_bytes=vmem_limit),
        )

    args = (x_p, w1, b1, w2, b2, w3, b3)
    try:
        out_padded = build(True)(*args)
    except Exception:
        # Older jax without pipeline_mode=pl.Buffered(1) support: fall back to the
        # default double-buffered weights (2x resident VMEM, identical numerics).
        out_padded = build(False)(*args)

    return out_padded[:B, :out_dim]


def init_params(key, input_size, hidden_size, output_size, dtype=jnp.float32):
    # Deterministic init mimicking nn.Linear's uniform(-1/sqrt(fan_in), 1/sqrt(fan_in)).
    ks = jax.random.split(key, 6)

    def lin(kw, kb, fan_in, fan_out):
        bound = 1.0 / jnp.sqrt(fan_in)
        w = jax.random.uniform(kw, (fan_in, fan_out), dtype, -bound, bound)
        b = jax.random.uniform(kb, (1, fan_out), dtype, -bound, bound)
        return w, b

    w1, b1 = lin(ks[0], ks[1], input_size, hidden_size)
    w2, b2 = lin(ks[2], ks[3], hidden_size, hidden_size)
    w3, b3 = lin(ks[4], ks[5], hidden_size, output_size)
    return dict(w1=w1, b1=b1, w2=w2, b2=b2, w3=w3, b3=b3)


def mlp_reference(x, p):
    h1 = jax.nn.sigmoid(x @ p["w1"] + p["b1"])
    h2 = jax.nn.sigmoid(h1 @ p["w2"] + p["b2"])
    return h2 @ p["w3"] + p["b3"]


if __name__ == "__main__":
    key = jax.random.PRNGKey(0)
    k_x, k_p, k_x2 = jax.random.split(key, 3)

    # Toy sizes matching the module spec (at this size the kernel is pure launch
    # overhead -- real wins come from batching many rows per call).
    batch, input_size, hidden_size, output_size = 8, 16, 32, 8
    x = jax.random.normal(k_x, (batch, input_size), jnp.float32)
    params = init_params(k_p, input_size, hidden_size, output_size)

    out = jax.block_until_ready(mlp_forward(x, params))
    ref = mlp_reference(x, params)
    assert out.shape == (batch, output_size)
    assert jnp.allclose(out, ref, atol=2e-5, rtol=2e-5), float(jnp.max(jnp.abs(out - ref)))

    # Second check: multi-step batch grid (resident weights + tiling + 2 grid steps).
    x2 = jax.random.normal(k_x2, (64, input_size), jnp.float32)
    out2 = jax.block_until_ready(mlp_forward(x2, params, tile_b=32))
    ref2 = mlp_reference(x2, params)
    assert out2.shape == (64, output_size)
    assert jnp.allclose(out2, ref2, atol=2e-5, rtol=2e-5), float(jnp.max(jnp.abs(out2 - ref2)))

    print("KERNEL_OK")
</pallas_src>

<mosaic_0001>
module attributes {stable_mosaic.version = 11 : i64} {
  func.func @mlp_kernel(%arg0: i32, %arg1: memref<8x128xf32, #tpu.memory_space<vmem>>, %arg2: memref<128x128xf32, #tpu.memory_space<vmem>>, %arg3: memref<1x128xf32, #tpu.memory_space<vmem>>, %arg4: memref<128x128xf32, #tpu.memory_space<vmem>>, %arg5: memref<1x128xf32, #tpu.memory_space<vmem>>, %arg6: memref<128x128xf32, #tpu.memory_space<vmem>>, %arg7: memref<1x128xf32, #tpu.memory_space<vmem>>, %arg8: memref<8x128xf32, #tpu.memory_space<vmem>>) attributes {dimension_semantics = [#tpu.dimension_semantics<parallel>], iteration_bounds = array<i64: 1>, scalar_prefetch = 0 : i64, scratch_operands = 0 : i64, tpu.core_type = #tpu.core_type<tc>, window_params = [{transform_indices = @transform_0, window_bounds = array<i64: 8, 128>}, {pipeline_mode = #tpu.pipeline_mode<synchronous>, transform_indices = @transform_1, window_bounds = array<i64: 128, 128>}, {pipeline_mode = #tpu.pipeline_mode<synchronous>, transform_indices = @transform_2, window_bounds = array<i64: 1, 128>}, {pipeline_mode = #tpu.pipeline_mode<synchronous>, transform_indices = @transform_3, window_bounds = array<i64: 128, 128>}, {pipeline_mode = #tpu.pipeline_mode<synchronous>, transform_indices = @transform_4, window_bounds = array<i64: 1, 128>}, {pipeline_mode = #tpu.pipeline_mode<synchronous>, transform_indices = @transform_5, window_bounds = array<i64: 128, 128>}, {pipeline_mode = #tpu.pipeline_mode<synchronous>, transform_indices = @transform_6, window_bounds = array<i64: 1, 128>}, {transform_indices = @transform_7, window_bounds = array<i64: 8, 128>}]} {
    %c0 = arith.constant 0 : index
    %c0_0 = arith.constant 0 : index
    %0 = vector.load %arg1[%c0, %c0_0] : memref<8x128xf32, #tpu.memory_space<vmem>>, vector<8x128xf32>
    %c0_1 = arith.constant 0 : index
    %c0_2 = arith.constant 0 : index
    %1 = vector.load %arg2[%c0_1, %c0_2] : memref<128x128xf32, #tpu.memory_space<vmem>>, vector<128x128xf32>
    %cst = arith.constant dense<0.000000e+00> : vector<8x128xf32>
    %2 = tpu.matmul %0, %1, %cst {dimension_numbers = #tpu.dot_dimension_numbers<[1], [0], [0], [1], [0, 0, 1, 1], [], []>} : vector<8x128xf32>, vector<128x128xf32>, vector<8x128xf32> -> vector<8x128xf32>
    %c0_3 = arith.constant 0 : index
    %c0_4 = arith.constant 0 : index
    %3 = vector.load %arg3[%c0_3, %c0_4] : memref<1x128xf32, #tpu.memory_space<vmem>>, vector<1x128xf32>
    %4 = vector.broadcast %3 : vector<1x128xf32> to vector<8x128xf32>
    %5 = arith.addf %2, %4 : vector<8x128xf32>
    %cst_5 = arith.constant 0.000000e+00 : f32
    %6 = vector.broadcast %cst_5 : f32 to vector<8x128xf32>
    %7 = arith.subf %6, %5 : vector<8x128xf32>
    %8 = math.exp %7 : vector<8x128xf32>
    %cst_6 = arith.constant 1.000000e+00 : f32
    %9 = vector.broadcast %cst_6 : f32 to vector<8x128xf32>
    %10 = arith.addf %9, %8 : vector<8x128xf32>
    %11 = tpu.reciprocal %10 : vector<8x128xf32> -> vector<8x128xf32>
    %c0_7 = arith.constant 0 : index
    %c0_8 = arith.constant 0 : index
    %12 = vector.load %arg4[%c0_7, %c0_8] : memref<128x128xf32, #tpu.memory_space<vmem>>, vector<128x128xf32>
    %cst_9 = arith.constant dense<0.000000e+00> : vector<8x128xf32>
    %13 = tpu.matmul %11, %12, %cst_9 {dimension_numbers = #tpu.dot_dimension_numbers<[1], [0], [0], [1], [0, 0, 1, 1], [], []>} : vector<8x128xf32>, vector<128x128xf32>, vector<8x128xf32> -> vector<8x128xf32>
    %c0_10 = arith.constant 0 : index
    %c0_11 = arith.constant 0 : index
    %14 = vector.load %arg5[%c0_10, %c0_11] : memref<1x128xf32, #tpu.memory_space<vmem>>, vector<1x128xf32>
    %15 = vector.broadcast %14 : vector<1x128xf32> to vector<8x128xf32>
    %16 = arith.addf %13, %15 : vector<8x128xf32>
    %cst_12 = arith.constant 0.000000e+00 : f32
    %17 = vector.broadcast %cst_12 : f32 to vector<8x128xf32>
    %18 = arith.subf %17, %16 : vector<8x128xf32>
    %19 = math.exp %18 : vector<8x128xf32>
    %cst_13 = arith.constant 1.000000e+00 : f32
    %20 = vector.broadcast %cst_13 : f32 to vector<8x128xf32>
    %21 = arith.addf %20, %19 : vector<8x128xf32>
    %22 = tpu.reciprocal %21 : vector<8x128xf32> -> vector<8x128xf32>
    %c0_14 = arith.constant 0 : index
    %c0_15 = arith.constant 0 : index
    %23 = vector.load %arg6[%c0_14, %c0_15] : memref<128x128xf32, #tpu.memory_space<vmem>>, vector<128x128xf32>
    %cst_16 = arith.constant dense<0.000000e+00> : vector<8x128xf32>
    %24 = tpu.matmul %22, %23, %cst_16 {dimension_numbers = #tpu.dot_dimension_numbers<[1], [0], [0], [1], [0, 0, 1, 1], [], []>} : vector<8x128xf32>, vector<128x128xf32>, vector<8x128xf32> -> vector<8x128xf32>
    %c0_17 = arith.constant 0 : index
    %c0_18 = arith.constant 0 : index
    %25 = vector.load %arg7[%c0_17, %c0_18] : memref<1x128xf32, #tpu.memory_space<vmem>>, vector<1x128xf32>
    %26 = vector.broadcast %25 : vector<1x128xf32> to vector<8x128xf32>
    %27 = arith.addf %24, %26 : vector<8x128xf32>
    %c0_19 = arith.constant 0 : index
    %c0_20 = arith.constant 0 : index
    %28 = vector.load %arg8[%c0_19, %c0_20] : memref<8x128xf32, #tpu.memory_space<vmem>>, vector<8x128xf32>
    tpu.vector_store %arg8[%c0_19, %c0_20], %27 {strides = array<i32>} : memref<8x128xf32, #tpu.memory_space<vmem>>, vector<8x128xf32>,
    return
  }
  func.func @transform_0(%arg0: i32) -> (i32, i32) {
    %c0_i32 = arith.constant 0 : i32
    %c0_i32_0 = arith.constant 0 : i32
    return %arg0, %c0_i32 : i32, i32
  }
  func.func @transform_1(%arg0: i32) -> (i32, i32) {
    %c0_i32 = arith.constant 0 : i32
    %c0_i32_0 = arith.constant 0 : i32
    %c0_i32_1 = arith.constant 0 : i32
    return %c0_i32, %c0_i32_0 : i32, i32
  }
  func.func @transform_2(%arg0: i32) -> (i32, i32) {
    %c0_i32 = arith.constant 0 : i32
    %c0_i32_0 = arith.constant 0 : i32
    %c0_i32_1 = arith.constant 0 : i32
    return %c0_i32, %c0_i32_0 : i32, i32
  }
  func.func @transform_3(%arg0: i32) -> (i32, i32) {
    %c0_i32 = arith.constant 0 : i32
    %c0_i32_0 = arith.constant 0 : i32
    %c0_i32_1 = arith.constant 0 : i32
    return %c0_i32, %c0_i32_0 : i32, i32
  }
  func.func @transform_4(%arg0: i32) -> (i32, i32) {
    %c0_i32 = arith.constant 0 : i32
    %c0_i32_0 = arith.constant 0 : i32
    %c0_i32_1 = arith.constant 0 : i32
    return %c0_i32, %c0_i32_0 : i32, i32
  }
  func.func @transform_5(%arg0: i32) -> (i32, i32) {
    %c0_i32 = arith.constant 0 : i32
    %c0_i32_0 = arith.constant 0 : i32
    %c0_i32_1 = arith.constant 0 : i32
    return %c0_i32, %c0_i32_0 : i32, i32
  }
  func.func @transform_6(%arg0: i32) -> (i32, i32) {
    %c0_i32 = arith.constant 0 : i32
    %c0_i32_0 = arith.constant 0 : i32
    %c0_i32_1 = arith.constant 0 : i32
    return %c0_i32, %c0_i32_0 : i32, i32
  }
  func.func @transform_7(%arg0: i32) -> (i32, i32) {
    %c0_i32 = arith.constant 0 : i32
    %c0_i32_0 = arith.constant 0 : i32
    return %arg0, %c0_i32 : i32, i32
  }
}

module attributes {stable_mosaic.version = 11 : i64} {
  func.func @mlp_kernel(%arg0: i32, %arg1: memref<8x128xf32, #tpu.memory_space<vmem>>, %arg2: memref<128x128xf32, #tpu.memory_space<vmem>>, %arg3: memref<1x128xf32, #tpu.memory_space<vmem>>, %arg4: memref<128x128xf32, #tpu.memory_space<vmem>>, %arg5: memref<1x128xf32, #tpu.memory_space<vmem>>, %arg6: memref<128x128xf32, #tpu.memory_space<vmem>>, %arg7: memref<1x128xf32, #tpu.memory_space<vmem>>, %arg8: memref<8x128xf32, #tpu.memory_space<vmem>>) attributes {dimension_semantics = [#tpu.dimension_semantics<parallel>], iteration_bounds = array<i64: 1>, scalar_prefetch = 0 : i64, scratch_operands = 0 : i64, tpu.core_type = #tpu.core_type<tc>, window_params = [{transform_indices = @transform_0, window_bounds = array<i64: 8, 128>}, {pipeline_mode = #tpu.pipeline_mode<synchronous>, transform_indices = @transform_1, window_bounds = array<i64: 128, 128>}, {pipeline_mode = #tpu.pipeline_mode<synchronous>, transform_indices = @transform_2, window_bounds = array<i64: 1, 128>}, {pipeline_mode = #tpu.pipeline_mode<synchronous>, transform_indices = @transform_3, window_bounds = array<i64: 128, 128>}, {pipeline_mode = #tpu.pipeline_mode<synchronous>, transform_indices = @transform_4, window_bounds = array<i64: 1, 128>}, {pipeline_mode = #tpu.pipeline_mode<synchronous>, transform_indices = @transform_5, window_bounds = array<i64: 128, 128>}, {pipeline_mode = #tpu.pipeline_mode<synchronous>, transform_indices = @transform_6, window_bounds = array<i64: 1, 128>}, {transform_indices = @transform_7, window_bounds = array<i64: 8, 128>}]} {
    %c0 = arith.constant 0 : index
    %c0_0 = arith.constant 0 : index
    %0 = vector.load %arg1[%c0, %c0_0] : memref<8x128xf32, #tpu.memory_space<vmem>>, vector<8x128xf32>
    %c0_1 = arith.constant 0 : index
    %c0_2 = arith.constant 0 : index
    %1 = vector.load %arg2[%c0_1, %c0_2] : memref<128x128xf32, #tpu.memory_space<vmem>>, vector<128x128xf32>
    %cst = arith.constant dense<0.000000e+00> : vector<8x128xf32>
    %2 = tpu.matmul %0, %1, %cst {dimension_numbers = #tpu.dot_dimension_numbers<[1], [0], [0], [1], [0, 0, 1, 1], [], []>} : vector<8x128xf32>, vector<128x128xf32>, vector<8x128xf32> -> vector<8x128xf32>
    %c0_3 = arith.constant 0 : index
    %c0_4 = arith.constant 0 : index
    %3 = vector.load %arg3[%c0_3, %c0_4] : memref<1x128xf32, #tpu.memory_space<vmem>>, vector<1x128xf32>
    %4 = vector.broadcast %3 : vector<1x128xf32> to vector<8x128xf32>
    %5 = arith.addf %2, %4 : vector<8x128xf32>
    %cst_5 = arith.constant 0.000000e+00 : f32
    %6 = vector.broadcast %cst_5 : f32 to vector<8x128xf32>
    %7 = arith.subf %6, %5 : vector<8x128xf32>
    %8 = math.exp %7 : vector<8x128xf32>
    %cst_6 = arith.constant 1.000000e+00 : f32
    %9 = vector.broadcast %cst_6 : f32 to vector<8x128xf32>
    %10 = arith.addf %9, %8 : vector<8x128xf32>
    %11 = tpu.reciprocal %10 : vector<8x128xf32> -> vector<8x128xf32>
    %c0_7 = arith.constant 0 : index
    %c0_8 = arith.constant 0 : index
    %12 = vector.load %arg4[%c0_7, %c0_8] : memref<128x128xf32, #tpu.memory_space<vmem>>, vector<128x128xf32>
    %cst_9 = arith.constant dense<0.000000e+00> : vector<8x128xf32>
    %13 = tpu.matmul %11, %12, %cst_9 {dimension_numbers = #tpu.dot_dimension_numbers<[1], [0], [0], [1], [0, 0, 1, 1], [], []>} : vector<8x128xf32>, vector<128x128xf32>, vector<8x128xf32> -> vector<8x128xf32>
    %c0_10 = arith.constant 0 : index
    %c0_11 = arith.constant 0 : index
    %14 = vector.load %arg5[%c0_10, %c0_11] : memref<1x128xf32, #tpu.memory_space<vmem>>, vector<1x128xf32>
    %15 = vector.broadcast %14 : vector<1x128xf32> to vector<8x128xf32>
    %16 = arith.addf %13, %15 : vector<8x128xf32>
    %cst_12 = arith.constant 0.000000e+00 : f32
    %17 = vector.broadcast %cst_12 : f32 to vector<8x128xf32>
    %18 = arith.subf %17, %16 : vector<8x128xf32>
    %19 = math.exp %18 : vector<8x128xf32>
    %cst_13 = arith.constant 1.000000e+00 : f32
    %20 = vector.broadcast %cst_13 : f32 to vector<8x128xf32>
    %21 = arith.addf %20, %19 : vector<8x128xf32>
    %22 = tpu.reciprocal %21 : vector<8x128xf32> -> vector<8x128xf32>
    %c0_14 = arith.constant 0 : index
    %c0_15 = arith.constant 0 : index
    %23 = vector.load %arg6[%c0_14, %c0_15] : memref<128x128xf32, #tpu.memory_space<vmem>>, vector<128x128xf32>
    %cst_16 = arith.constant dense<0.000000e+00> : vector<8x128xf32>
    %24 = tpu.matmul %22, %23, %cst_16 {dimension_numbers = #tpu.dot_dimension_numbers<[1], [0], [0], [1], [0, 0, 1, 1], [], []>} : vector<8x128xf32>, vector<128x128xf32>, vector<8x128xf32> -> vector<8x128xf32>
    %c0_17 = arith.constant 0 : index
    %c0_18 = arith.constant 0 : index
    %25 = vector.load %arg7[%c0_17, %c0_18] : memref<1x128xf32, #tpu.memory_space<vmem>>, vector<1x128xf32>
    %26 = vector.broadcast %25 : vector<1x128xf32> to vector<8x128xf32>
    %27 = arith.addf %24, %26 : vector<8x128xf32>
    %c0_19 = arith.constant 0 : index
    %c0_20 = arith.constant 0 : index
    %28 = vector.load %arg8[%c0_19, %c0_20] : memref<8x128xf32, #tpu.memory_space<vmem>>, vector<8x128xf32>
    tpu.vector_store %arg8[%c0_19, %c0_20], %27 {strides = array<i32>} : memref<8x128xf32, #tpu.memory_space<vmem>>, vector<8x128xf32>,
    return
  }
  func.func @transform_0(%arg0: i32) -> (i32, i32) {
    %c0_i32 = arith.constant 0 : i32
    %c0_i32_0 = arith.constant 0 : i32
    return %arg0, %c0_i32 : i32, i32
  }
  func.func @transform_1(%arg0: i32) -> (i32, i32) {
    %c0_i32 = arith.constant 0 : i32
    %c0_i32_0 = arith.constant 0 : i32
    %c0_i32_1 = arith.constant 0 : i32
    return %c0_i32, %c0_i32_0 : i32, i32
  }
  func.func @transform_2(%arg0: i32) -> (i32, i32) {
    %c0_i32 = arith.constant 0 : i32
    %c0_i32_0 = arith.constant 0 : i32
    %c0_i32_1 = arith.constant 0 : i32
    return %c0_i32, %c0_i32_0 : i32, i32
  }
  func.func @transform_3(%arg0: i32) -> (i32, i32) {
    %c0_i32 = arith.constant 0 : i32
    %c0_i32_0 = arith.constant 0 : i32
    %c0_i32_1 = arith.constant 0 : i32
    return %c0_i32, %c0_i32_0 : i32, i32
  }
  func.func @transform_4(%arg0: i32) -> (i32, i32) {
    %c0_i32 = arith.constant 0 : i32
    %c0_i32_0 = arith.constant 0 : i32
    %c0_i32_1 = arith.constant 0 : i32
    return %c0_i32, %c0_i32_0 : i32, i32
  }
  func.func @transform_5(%arg0: i32) -> (i32, i32) {
    %c0_i32 = arith.constant 0 : i32
    %c0_i32_0 = arith.constant 0 : i32
    %c0_i32_1 = arith.constant 0 : i32
    return %c0_i32, %c0_i32_0 : i32, i32
  }
  func.func @transform_6(%arg0: i32) -> (i32, i32) {
    %c0_i32 = arith.constant 0 : i32
    %c0_i32_0 = arith.constant 0 : i32
    %c0_i32_1 = arith.constant 0 : i32
    return %c0_i32, %c0_i32_0 : i32, i32
  }
  func.func @transform_7(%arg0: i32) -> (i32, i32) {
    %c0_i32 = arith.constant 0 : i32
    %c0_i32_0 = arith.constant 0 : i32
    return %arg0, %c0_i32 : i32, i32
  }
}

</mosaic_0001>

<bundles_post_ra>
// kernel: tpu_custom_call.1
= control target key start
LH: loop header
LB: loop body
LE: loop exit
PB: predicated region body
PF: predicated region fallthrough
CT: control target
= control target key end

     0   :  { %12 = vsyncpa [#allocation3], 0  ;;  %s482_s0 = inlined_call_operand.hbm [shape: f32[8,128], index: 0, kind: input, shape index: {}]   ;;  %s483_s1 = inlined_call_operand.hbm [shape: f32[128,128], index: 1, kind: input, shape index: {}]   ;;  %s484_s2 = inlined_call_operand.vmem [shape: f32[1,128], index: 2, kind: input, shape index: {}]   ;;  %s485_s3 = inlined_call_operand.hbm [shape: f32[128,128], index: 3, kind: input, shape index: {}]   ;;  %s486_s4 = inlined_call_operand.vmem [shape: f32[1,128], index: 4, kind: input, shape index: {}]   ;;  %s487_s5 = inlined_call_operand.hbm [shape: f32[128,128], index: 5, kind: input, shape index: {}]   ;;  %s488_s6 = inlined_call_operand.vmem [shape: f32[1,128], index: 6, kind: input, shape index: {}]   ;;  %s489_s7 = inlined_call_operand.hbm [shape: f32[8,128], index: 7, kind: output, shape index: {}]  }
   0x1   :  { %13 = vsyncpa [#allocation6], 0 }
   0x2   :  { %14 = vsyncpa [#allocation9], 0  ;;  %s31_s26 = sshll.u32 %s483_s1, 4  ;;  %s32_s26 = int_to_ptr.hbm [resolvable:$true] %s31_s26 }
   0x3   :  { %15 = vsyncpa [#allocation4], 0  ;;  %s411_s27 = smov [#allocation5]   ;;  %s21_s8 = sshll.u32 %s482_s0, 4  ;;  %s22_s8 = int_to_ptr.hbm [resolvable:$true] %s21_s8 }
   0x4   :  { %s33_s28 = sshll.u32 %s411_s27, 4  ;;  %s412_s9 = smov 128   ;;  %s34_s28 = int_to_ptr.vmem [resolvable:$true] %s33_s28 }
   0x5   :  { %s413_s10 = smov 8   ;;  %s414_s11 = smov [#allocation2]  }
   0x6   :  { %39 = dma.hbm_to_vmem [thread:$0]  %s32_s26, 2048, %s34_s28, [#allocation6], %s412_s9, %s412_s9, %s413_s10  }
   0x7   :  { %s23_s12 = sshll.u32 %s414_s11, 4  ;;  %s46_s15 = sshll.u32 %s485_s3, 4  ;;  %s24_s12 = int_to_ptr.vmem [resolvable:$true] %s23_s12  ;;  %s47_s15 = int_to_ptr.hbm [resolvable:$true] %s46_s15 }
   0x8   :  { %26 = dma.hbm_to_vmem [thread:$0]  %s22_s8, 128, %s24_s12, [#allocation3]  }
   0x9   :  { %s61_s17 = sshll.u32 %s487_s5, 4  ;;  %s415_s18 = smov [#allocation7]   ;;  %s62_s17 = int_to_ptr.hbm [resolvable:$true] %s61_s17 }
   0xa   :  { %s48_s19 = sshll.u32 %s415_s18, 4  ;;  %s416_s0 = smov [#allocation8]   ;;  %s49_s19 = int_to_ptr.vmem [resolvable:$true] %s48_s19 }
   0xb   :  { %54 = dma.hbm_to_vmem [thread:$0]  %s47_s15, 2048, %s49_s19, [#allocation6], %s412_s9, %s412_s9, %s413_s10  }
   0xc   :  { %s63_s20 = sshll.u32 %s416_s0, 4  ;;  %s64_s20 = int_to_ptr.vmem [resolvable:$true] %s63_s20 }
   0xd   :  { %69 = dma.hbm_to_vmem [thread:$0]  %s62_s17, 2048, %s64_s20, [#allocation9], %s412_s9, %s412_s9, %s413_s10  }
   0xe   :  { %403 = dma.done.wait [#allocation3], 128  }
   0xf   :  { %404 = vsyncadd [#allocation3], 4294967168 }
  0x10   :  { %405 = dma.done.wait [#allocation6], 4096  }
  0x11   :  { %406 = vsyncadd [#allocation6], 4294963200 }
  0x12   :  { %407 = dma.done.wait [#allocation9], 2048  }
  0x13   :  { %408 = vsyncadd [#allocation9], 4294965248  ;;  %v104_v0 = vld [vmem:[#allocation5 + $0x78] sm:$0xff]  ;;  %v103_v1 = vld [vmem:[#allocation5 + $0x70] sm:$0xff]  ;;  %s417_s23 = smov [#allocation10]   ;;  %s253_s27 = sshll.u32 %s489_s7, 4  ;;  %s254_s27 = int_to_ptr.hbm [resolvable:$true] %s253_s27 }
  0x14   :  { %109 = vmatpush.msra.mxu0 %v104_v0  ;;  %v102_v2 = vld [vmem:[#allocation5 + $0x68] sm:$0xff]  ;;  %v101_v3 = vld [vmem:[#allocation5 + $0x60] sm:$0xff]  ;;  %v100_v4 = vld [vmem:[#allocation5 + $0x58] sm:$0xff]  ;;  %s251_s24 = sshll.u32 %s417_s23, 4  ;;  %s252_s24 = int_to_ptr.vmem [resolvable:$true] %s251_s24 }
  0x15   :  { %v99_v5 = vld [vmem:[#allocation5 + $0x50] sm:$0xff]  ;;  %v98_v6 = vld [vmem:[#allocation5 + $0x48] sm:$0xff]  ;;  %v97_v7 = vld [vmem:[#allocation5 + $0x40] sm:$0xff] }
  0x16   :  { %110 = vmatpush.msra.mxu0 %v103_v1  ;;  %v96_v8 = vld [vmem:[#allocation5 + $0x38] sm:$0xff]  ;;  %v95_v9 = vld [vmem:[#allocation5 + $0x30] sm:$0xff]  ;;  %v94_v10 = vld [vmem:[#allocation5 + $0x28] sm:$0xff] }
  0x17   :  { %v93_v11 = vld [vmem:[#allocation5 + $0x20] sm:$0xff]  ;;  %v92_v12 = vld [vmem:[#allocation5 + $0x18] sm:$0xff]  ;;  %v91_v13 = vld [vmem:[#allocation5 + $0x10] sm:$0xff] }
  0x18   :  { %111 = vmatpush.msra.mxu0 %v102_v2  ;;  %v90_v14 = vld [vmem:[#allocation5 + $0x8] sm:$0xff]  ;;  %v89_v15 = vld [vmem:[#allocation5] sm:$0xff]  ;;  %v88_v16 = vld [vmem:[#allocation2] sm:$0xff] }
  0x19   :  { %v162_v17 = vld [vmem:[#allocation7 + $0x78] sm:$0xff]  ;;  %v161_v18 = vld [vmem:[#allocation7 + $0x70] sm:$0xff]  ;;  %v160_v19 = vld [vmem:[#allocation7 + $0x68] sm:$0xff] }
  0x1a   :  { %112 = vmatpush.msra.mxu0 %v101_v3  ;;  %167 = vmatpush.msra.mxu1 %v162_v17  ;;  %v159_v20 = vld [vmem:[#allocation7 + $0x60] sm:$0xff]  ;;  %v158_v21 = vld [vmem:[#allocation7 + $0x58] sm:$0xff]  ;;  %v157_v22 = vld [vmem:[#allocation7 + $0x50] sm:$0xff] }
  0x1b   :  { %v156_v23 = vld [vmem:[#allocation7 + $0x48] sm:$0xff]  ;;  %v155_v24 = vld [vmem:[#allocation7 + $0x40] sm:$0xff]  ;;  %v154_v25 = vld [vmem:[#allocation7 + $0x38] sm:$0xff] }
  0x1c   :  { %113 = vmatpush.msra.mxu0 %v100_v4  ;;  %168 = vmatpush.msra.mxu1 %v161_v18  ;;  %v153_v26 = vld [vmem:[#allocation7 + $0x30] sm:$0xff]  ;;  %v152_v27 = vld [vmem:[#allocation7 + $0x28] sm:$0xff]  ;;  %v151_v28 = vld [vmem:[#allocation7 + $0x20] sm:$0xff] }
  0x1d   :  { %v150_v29 = vld [vmem:[#allocation7 + $0x18] sm:$0xff]  ;;  %v149_v30 = vld [vmem:[#allocation7 + $0x10] sm:$0xff]  ;;  %v148_v31 = vld [vmem:[#allocation7 + $0x8] sm:$0xff] }
  0x1e   :  { %114 = vmatpush.msra.mxu0 %v99_v5  ;;  %169 = vmatpush.msra.mxu1 %v160_v19  ;;  %v272_v32 = vld [vmem:[%s484_s2] ss:$0 sm:$0xff]  ;;  %v147_v33 = vld [vmem:[#allocation7] sm:$0xff]  ;;  %v219_v51 = vld [vmem:[#allocation8 + $0x70] sm:$0xff] }
  0x1f   :  { %v220_v50 = vld [vmem:[#allocation8 + $0x78] sm:$0xff]  ;;  %v218_v52 = vld [vmem:[#allocation8 + $0x68] sm:$0xff]  ;;  %v217_v53 = vld [vmem:[#allocation8 + $0x60] sm:$0xff] }
  0x20   :  { %115 = vmatpush.msra.mxu0 %v98_v6  ;;  %170 = vmatpush.msra.mxu1 %v159_v20  ;;  %v216_v54 = vld [vmem:[#allocation8 + $0x58] sm:$0xff]  ;;  %v215_v55 = vld [vmem:[#allocation8 + $0x50] sm:$0xff]  ;;  %v214_v56 = vld [vmem:[#allocation8 + $0x48] sm:$0xff] }
  0x21   :  { %225 = vmatpush.msra.mxu2 %v220_v50  ;;  %v213_v57 = vld [vmem:[#allocation8 + $0x40] sm:$0xff]  ;;  %v212_v58 = vld [vmem:[#allocation8 + $0x38] sm:$0xff]  ;;  %v211_v59 = vld [vmem:[#allocation8 + $0x30] sm:$0xff] }
  0x22   :  { %116 = vmatpush.msra.mxu0 %v97_v7  ;;  %171 = vmatpush.msra.mxu1 %v158_v21  ;;  %v210_v60 = vld [vmem:[#allocation8 + $0x28] sm:$0xff]  ;;  %v209_v61 = vld [vmem:[#allocation8 + $0x20] sm:$0xff]  ;;  %v208_v62 = vld [vmem:[#allocation8 + $0x18] sm:$0xff] }
  0x23   :  { %226 = vmatpush.msra.mxu2 %v219_v51  ;;  %v207_v63 = vld [vmem:[#allocation8 + $0x10] sm:$0xff]  ;;  %v206_v0 = vld [vmem:[#allocation8 + $0x8] sm:$0xff]  ;;  %v273_v1 = vld [vmem:[%s486_s4] ss:$0 sm:$0xff] }
  0x24   :  { %117 = vmatpush.msra.mxu0 %v96_v8  ;;  %172 = vmatpush.msra.mxu1 %v157_v22  ;;  %v205_v2 = vld [vmem:[#allocation8] sm:$0xff]  ;;  %v274_v19 = vld [vmem:[%s488_s6] ss:$0 sm:$0xff] }
  0x25   :  { %227 = vmatpush.msra.mxu2 %v218_v52 }
  0x26   :  { %118 = vmatpush.msra.mxu0 %v95_v9  ;;  %173 = vmatpush.msra.mxu1 %v156_v23 }
  0x27   :  { %228 = vmatpush.msra.mxu2 %v217_v53 }
  0x28   :  { %119 = vmatpush.msra.mxu0 %v94_v10  ;;  %174 = vmatpush.msra.mxu1 %v155_v24 }
  0x29   :  { %229 = vmatpush.msra.mxu2 %v216_v54 }
  0x2a   :  { %120 = vmatpush.msra.mxu0 %v93_v11  ;;  %175 = vmatpush.msra.mxu1 %v154_v25 }
  0x2b   :  { %230 = vmatpush.msra.mxu2 %v215_v55 }
  0x2c   :  { %121 = vmatpush.msra.mxu0 %v92_v12  ;;  %176 = vmatpush.msra.mxu1 %v153_v26 }
  0x2d   :  { %231 = vmatpush.msra.mxu2 %v214_v56 }
  0x2e   :  { %122 = vmatpush.msra.mxu0 %v91_v13  ;;  %177 = vmatpush.msra.mxu1 %v152_v27 }
  0x2f   :  { %232 = vmatpush.msra.mxu2 %v213_v57 }
  0x30   :  { %123 = vmatpush.msra.mxu0 %v90_v14  ;;  %178 = vmatpush.msra.mxu1 %v151_v28 }
  0x31   :  { %233 = vmatpush.msra.mxu2 %v212_v58 }
  0x32   :  { %124 = vmatpush.msra.mxu0 %v89_v15  ;;  %179 = vmatpush.msra.mxu1 %v150_v29 }
  0x33   :  { %125 = vmatmul.f32.vlgmr.msra.gmra.mxu0 %v88_v16  ;;  %234 = vmatpush.msra.mxu2 %v211_v59 }
  0x34   :  { %180 = vmatpush.msra.mxu1 %v149_v30 }
  0x35   :  { %235 = vmatpush.msra.mxu2 %v210_v60 }
  0x36   :  { %181 = vmatpush.msra.mxu1 %v148_v31 }
  0x37   :  { %236 = vmatpush.msra.mxu2 %v209_v61 }
  0x38   :  { %182 = vmatpush.msra.mxu1 %v147_v33 }
  0x39   :  { %237 = vmatpush.msra.mxu2 %v208_v62 }
  0x3b   :  { %238 = vmatpush.msra.mxu2 %v207_v63 }
  0x3d   :  { %239 = vmatpush.msra.mxu2 %v206_v0 }
  0x3f   :  { %240 = vmatpush.msra.mxu2 %v205_v2 }
  0xb0   :  { %v126_v34 = vpop.f32.mrf.mxu0 }
  0xb1   :  { %v127_v35 = vadd.f32 %v272_v32, %v126_v34 }
  0xb3   :  { %v129_v36 = vsub.f32 0.0, %v127_v35 }
  0xb5   :  { %v130_v37 = vmul.f32 1.442695, %v129_v36 }
  0xb7   :  { %275 = vpow2.f32 %v130_v37 }
  0xbd   :  { %v276_v38 = vpop.eup %275 }
  0xbe   :  { %v132_v39 = vadd.f32 1.0, %v276_v38 }
  0xc0   :  { %277 = vrcp.f32 %v132_v39  ;;  %v144_v43 = vand.u32 2147483648, %v132_v39  ;;  %v142_v45 = vand.u32 2147483647, %v132_v39  ;;  %vm138_vm1 = vweird.f32 %v132_v39 }
  0xc2   :  { %v145_v47 = vor.u32 1.1754944e-38, %v144_v43  ;;  %vm143_vm3 = vcmp.eq.f32.partialorder %v142_v45, 8.507059e+37 }
  0xc6   :  { %v278_v40 = vpop.eup %277 }
  0xc7   :  { %v134_v41 = vmul.f32 %v278_v40, %v132_v39  ;;  %vm139_vm0 = vweird.f32 %v278_v40 }
  0xc8   :  { %vm140_vm2 = vmor %vm138_vm1, %vm139_vm0 }
  0xc9   :  { %v135_v42 = vsub.f32 1.0, %v134_v41 }
  0xcb   :  { %v136_v44 = vmul.f32 %v278_v40, %v135_v42 }
  0xcd   :  { %v137_v46 = vadd.f32 %v278_v40, %v136_v44 }
  0xcf   :  { %v141_v48 = vsel %vm140_vm2, %v278_v40, %v137_v46 }
  0xd0   :  { %v146_v49 = vsel %vm143_vm3, %v145_v47, %v141_v48 }
  0xd1   :  { %183 = vmatmul.f32.vlgmr.msra.gmra.mxu1 %v146_v49 }
 0x14e   :  { %v184_v3 = vpop.f32.mrf.mxu1 }
 0x14f   :  { %v185_v4 = vadd.f32 %v273_v1, %v184_v3 }
 0x151   :  { %v187_v5 = vsub.f32 0.0, %v185_v4 }
 0x153   :  { %v188_v6 = vmul.f32 1.442695, %v187_v5 }
 0x155   :  { %279 = vpow2.f32 %v188_v6 }
 0x15b   :  { %v280_v7 = vpop.eup %279 }
 0x15c   :  { %v190_v8 = vadd.f32 1.0, %v280_v7 }
 0x15e   :  { %281 = vrcp.f32 %v190_v8  ;;  %v202_v12 = vand.u32 2147483648, %v190_v8  ;;  %v200_v14 = vand.u32 2147483647, %v190_v8  ;;  %vm196_vm5 = vweird.f32 %v190_v8 }
 0x160   :  { %v203_v16 = vor.u32 1.1754944e-38, %v202_v12  ;;  %vm201_vm7 = vcmp.eq.f32.partialorder %v200_v14, 8.507059e+37 }
 0x164   :  { %v282_v9 = vpop.eup %281 }
 0x165   :  { %v192_v10 = vmul.f32 %v282_v9, %v190_v8  ;;  %vm197_vm4 = vweird.f32 %v282_v9 }
 0x166   :  { %vm198_vm6 = vmor %vm196_vm5, %vm197_vm4 }
 0x167   :  { %v193_v11 = vsub.f32 1.0, %v192_v10 }
 0x169   :  { %v194_v13 = vmul.f32 %v282_v9, %v193_v11 }
 0x16b   :  { %v195_v15 = vadd.f32 %v282_v9, %v194_v13 }
 0x16d   :  { %v199_v17 = vsel %vm198_vm6, %v282_v9, %v195_v15 }
 0x16e   :  { %v204_v18 = vsel %vm201_vm7, %v203_v16, %v199_v17 }
 0x16f   :  { %241 = vmatmul.f32.vlgmr.msra.gmra.mxu2 %v204_v18 }
 0x1f2   :  { %v242_v20 = vpop.f32.mrf.mxu2 }
 0x1f3   :  { %v243_v21 = vadd.f32 %v274_v19, %v242_v20 }
 0x1f5   :  { %245 = vst [vmem:[#allocation10] sm:$0xff] %v243_v21 }
 0x1f6   :  { %256 = dma.vmem_to_hbm [thread:$0]  %s252_s24, 128, %s254_s27, [#allocation4]  }
 0x1f7   :  { %409 = dma.done.wait [#allocation4], 128  }
 0x1f8   :  { %410 = vsyncadd [#allocation4], 4294967168 }
 0x1f9   :  { %261 = vsyncpa [#allocation3], 1 }
 0x1fa   :  { %262 = vsyncpa [#allocation6], 1 }
 0x1fb   :  { %263 = vsyncpa [#allocation9], 1 }
 0x1fc   :  { %264 = vsyncpa [#allocation4], 1 }

// kernel: tpu_custom_call.1
= control target key start
LH: loop header
LB: loop body
LE: loop exit
PB: predicated region body
PF: predicated region fallthrough
CT: control target
= control target key end

     0   :  { %12 = vsyncpa [#allocation3], 0  ;;  %s482_s0 = inlined_call_operand.hbm [shape: f32[8,128], index: 0, kind: input, shape index: {}]   ;;  %s483_s1 = inlined_call_operand.hbm [shape: f32[128,128], index: 1, kind: input, shape index: {}]   ;;  %s484_s2 = inlined_call_operand.vmem [shape: f32[1,128], index: 2, kind: input, shape index: {}]   ;;  %s485_s3 = inlined_call_operand.hbm [shape: f32[128,128], index: 3, kind: input, shape index: {}]   ;;  %s486_s4 = inlined_call_operand.vmem [shape: f32[1,128], index: 4, kind: input, shape index: {}]   ;;  %s487_s5 = inlined_call_operand.hbm [shape: f32[128,128], index: 5, kind: input, shape index: {}]   ;;  %s488_s6 = inlined_call_operand.vmem [shape: f32[1,128], index: 6, kind: input, shape index: {}]   ;;  %s489_s7 = inlined_call_operand.hbm [shape: f32[8,128], index: 7, kind: output, shape index: {}]  }
   0x1   :  { %13 = vsyncpa [#allocation6], 0 }
   0x2   :  { %14 = vsyncpa [#allocation9], 0  ;;  %s31_s26 = sshll.u32 %s483_s1, 4  ;;  %s32_s26 = int_to_ptr.hbm [resolvable:$true] %s31_s26 }
   0x3   :  { %15 = vsyncpa [#allocation4], 0  ;;  %s411_s27 = smov [#allocation5]   ;;  %s21_s8 = sshll.u32 %s482_s0, 4  ;;  %s22_s8 = int_to_ptr.hbm [resolvable:$true] %s21_s8 }
   0x4   :  { %s33_s28 = sshll.u32 %s411_s27, 4  ;;  %s412_s9 = smov 128   ;;  %s34_s28 = int_to_ptr.vmem [resolvable:$true] %s33_s28 }
   0x5   :  { %s413_s10 = smov 8   ;;  %s414_s11 = smov [#allocation2]  }
   0x6   :  { %39 = dma.hbm_to_vmem [thread:$0]  %s32_s26, 2048, %s34_s28, [#allocation6], %s412_s9, %s412_s9, %s413_s10  }
   0x7   :  { %s23_s12 = sshll.u32 %s414_s11, 4  ;;  %s46_s15 = sshll.u32 %s485_s3, 4  ;;  %s24_s12 = int_to_ptr.vmem [resolvable:$true] %s23_s12  ;;  %s47_s15 = int_to_ptr.hbm [resolvable:$true] %s46_s15 }
   0x8   :  { %26 = dma.hbm_to_vmem [thread:$0]  %s22_s8, 128, %s24_s12, [#allocation3]  }
   0x9   :  { %s61_s17 = sshll.u32 %s487_s5, 4  ;;  %s415_s18 = smov [#allocation7]   ;;  %s62_s17 = int_to_ptr.hbm [resolvable:$true] %s61_s17 }
   0xa   :  { %s48_s19 = sshll.u32 %s415_s18, 4  ;;  %s416_s0 = smov [#allocation8]   ;;  %s49_s19 = int_to_ptr.vmem [resolvable:$true] %s48_s19 }
   0xb   :  { %54 = dma.hbm_to_vmem [thread:$0]  %s47_s15, 2048, %s49_s19, [#allocation6], %s412_s9, %s412_s9, %s413_s10  }
   0xc   :  { %s63_s20 = sshll.u32 %s416_s0, 4  ;;  %s64_s20 = int_to_ptr.vmem [resolvable:$true] %s63_s20 }
   0xd   :  { %69 = dma.hbm_to_vmem [thread:$0]  %s62_s17, 2048, %s64_s20, [#allocation9], %s412_s9, %s412_s9, %s413_s10  }
   0xe   :  { %403 = dma.done.wait [#allocation3], 128  }
   0xf   :  { %404 = vsyncadd [#allocation3], 4294967168 }
  0x10   :  { %405 = dma.done.wait [#allocation6], 4096  }
  0x11   :  { %406 = vsyncadd [#allocation6], 4294963200 }
  0x12   :  { %407 = dma.done.wait [#allocation9], 2048  }
  0x13   :  { %408 = vsyncadd [#allocation9], 4294965248  ;;  %v104_v0 = vld [vmem:[#allocation5 + $0x78] sm:$0xff]  ;;  %v103_v1 = vld [vmem:[#allocation5 + $0x70] sm:$0xff]  ;;  %s417_s23 = smov [#allocation10]   ;;  %s253_s27 = sshll.u32 %s489_s7, 4  ;;  %s254_s27 = int_to_ptr.hbm [resolvable:$true] %s253_s27 }
  0x14   :  { %109 = vmatpush.msra.mxu0 %v104_v0  ;;  %v102_v2 = vld [vmem:[#allocation5 + $0x68] sm:$0xff]  ;;  %v101_v3 = vld [vmem:[#allocation5 + $0x60] sm:$0xff]  ;;  %v100_v4 = vld [vmem:[#allocation5 + $0x58] sm:$0xff]  ;;  %s251_s24 = sshll.u32 %s417_s23, 4  ;;  %s252_s24 = int_to_ptr.vmem [resolvable:$true] %s251_s24 }
  0x15   :  { %v99_v5 = vld [vmem:[#allocation5 + $0x50] sm:$0xff]  ;;  %v98_v6 = vld [vmem:[#allocation5 + $0x48] sm:$0xff]  ;;  %v97_v7 = vld [vmem:[#allocation5 + $0x40] sm:$0xff] }
  0x16   :  { %110 = vmatpush.msra.mxu0 %v103_v1  ;;  %v96_v8 = vld [vmem:[#allocation5 + $0x38] sm:$0xff]  ;;  %v95_v9 = vld [vmem:[#allocation5 + $0x30] sm:$0xff]  ;;  %v94_v10 = vld [vmem:[#allocation5 + $0x28] sm:$0xff] }
  0x17   :  { %v93_v11 = vld [vmem:[#allocation5 + $0x20] sm:$0xff]  ;;  %v92_v12 = vld [vmem:[#allocation5 + $0x18] sm:$0xff]  ;;  %v91_v13 = vld [vmem:[#allocation5 + $0x10] sm:$0xff] }
  0x18   :  { %111 = vmatpush.msra.mxu0 %v102_v2  ;;  %v90_v14 = vld [vmem:[#allocation5 + $0x8] sm:$0xff]  ;;  %v89_v15 = vld [vmem:[#allocation5] sm:$0xff]  ;;  %v88_v16 = vld [vmem:[#allocation2] sm:$0xff] }
  0x19   :  { %v162_v17 = vld [vmem:[#allocation7 + $0x78] sm:$0xff]  ;;  %v161_v18 = vld [vmem:[#allocation7 + $0x70] sm:$0xff]  ;;  %v160_v19 = vld [vmem:[#allocation7 + $0x68] sm:$0xff] }
  0x1a   :  { %112 = vmatpush.msra.mxu0 %v101_v3  ;;  %167 = vmatpush.msra.mxu1 %v162_v17  ;;  %v159_v20 = vld [vmem:[#allocation7 + $0x60] sm:$0xff]  ;;  %v158_v21 = vld [vmem:[#allocation7 + $0x58] sm:$0xff]  ;;  %v157_v22 = vld [vmem:[#allocation7 + $0x50] sm:$0xff] }
  0x1b   :  { %v156_v23 = vld [vmem:[#allocation7 + $0x48] sm:$0xff]  ;;  %v155_v24 = vld [vmem:[#allocation7 + $0x40] sm:$0xff]  ;;  %v154_v25 = vld [vmem:[#allocation7 + $0x38] sm:$0xff] }
  0x1c   :  { %113 = vmatpush.msra.mxu0 %v100_v4  ;;  %168 = vmatpush.msra.mxu1 %v161_v18  ;;  %v153_v26 = vld [vmem:[#allocation7 + $0x30] sm:$0xff]  ;;  %v152_v27 = vld [vmem:[#allocation7 + $0x28] sm:$0xff]  ;;  %v151_v28 = vld [vmem:[#allocation7 + $0x20] sm:$0xff] }
  0x1d   :  { %v150_v29 = vld [vmem:[#allocation7 + $0x18] sm:$0xff]  ;;  %v149_v30 = vld [vmem:[#allocation7 + $0x10] sm:$0xff]  ;;  %v148_v31 = vld [vmem:[#allocation7 + $0x8] sm:$0xff] }
  0x1e   :  { %114 = vmatpush.msra.mxu0 %v99_v5  ;;  %169 = vmatpush.msra.mxu1 %v160_v19  ;;  %v272_v32 = vld [vmem:[%s484_s2] ss:$0 sm:$0xff]  ;;  %v147_v33 = vld [vmem:[#allocation7] sm:$0xff]  ;;  %v219_v51 = vld [vmem:[#allocation8 + $0x70] sm:$0xff] }
  0x1f   :  { %v220_v50 = vld [vmem:[#allocation8 + $0x78] sm:$0xff]  ;;  %v218_v52 = vld [vmem:[#allocation8 + $0x68] sm:$0xff]  ;;  %v217_v53 = vld [vmem:[#allocation8 + $0x60] sm:$0xff] }
  0x20   :  { %115 = vmatpush.msra.mxu0 %v98_v6  ;;  %170 = vmatpush.msra.mxu1 %v159_v20  ;;  %v216_v54 = vld [vmem:[#allocation8 + $0x58] sm:$0xff]  ;;  %v215_v55 = vld [vmem:[#allocation8 + $0x50] sm:$0xff]  ;;  %v214_v56 = vld [vmem:[#allocation8 + $0x48] sm:$0xff] }
  0x21   :  { %225 = vmatpush.msra.mxu2 %v220_v50  ;;  %v213_v57 = vld [vmem:[#allocation8 + $0x40] sm:$0xff]  ;;  %v212_v58 = vld [vmem:[#allocation8 + $0x38] sm:$0xff]  ;;  %v211_v59 = vld [vmem:[#allocation8 + $0x30] sm:$0xff] }
  0x22   :  { %116 = vmatpush.msra.mxu0 %v97_v7  ;;  %171 = vmatpush.msra.mxu1 %v158_v21  ;;  %v210_v60 = vld [vmem:[#allocation8 + $0x28] sm:$0xff]  ;;  %v209_v61 = vld [vmem:[#allocation8 + $0x20] sm:$0xff]  ;;  %v208_v62 = vld [vmem:[#allocation8 + $0x18] sm:$0xff] }
  0x23   :  { %226 = vmatpush.msra.mxu2 %v219_v51  ;;  %v207_v63 = vld [vmem:[#allocation8 + $0x10] sm:$0xff]  ;;  %v206_v0 = vld [vmem:[#allocation8 + $0x8] sm:$0xff]  ;;  %v273_v1 = vld [vmem:[%s486_s4] ss:$0 sm:$0xff] }
  0x24   :  { %117 = vmatpush.msra.mxu0 %v96_v8  ;;  %172 = vmatpush.msra.mxu1 %v157_v22  ;;  %v205_v2 = vld [vmem:[#allocation8] sm:$0xff]  ;;  %v274_v19 = vld [vmem:[%s488_s6] ss:$0 sm:$0xff] }
  0x25   :  { %227 = vmatpush.msra.mxu2 %v218_v52 }
  0x26   :  { %118 = vmatpush.msra.mxu0 %v95_v9  ;;  %173 = vmatpush.msra.mxu1 %v156_v23 }
  0x27   :  { %228 = vmatpush.msra.mxu2 %v217_v53 }
  0x28   :  { %119 = vmatpush.msra.mxu0 %v94_v10  ;;  %174 = vmatpush.msra.mxu1 %v155_v24 }
  0x29   :  { %229 = vmatpush.msra.mxu2 %v216_v54 }
  0x2a   :  { %120 = vmatpush.msra.mxu0 %v93_v11  ;;  %175 = vmatpush.msra.mxu1 %v154_v25 }
  0x2b   :  { %230 = vmatpush.msra.mxu2 %v215_v55 }
  0x2c   :  { %121 = vmatpush.msra.mxu0 %v92_v12  ;;  %176 = vmatpush.msra.mxu1 %v153_v26 }
  0x2d   :  { %231 = vmatpush.msra.mxu2 %v214_v56 }
  0x2e   :  { %122 = vmatpush.msra.mxu0 %v91_v13  ;;  %177 = vmatpush.msra.mxu1 %v152_v27 }
  0x2f   :  { %232 = vmatpush.msra.mxu2 %v213_v57 }
  0x30   :  { %123 = vmatpush.msra.mxu0 %v90_v14  ;;  %178 = vmatpush.msra.mxu1 %v151_v28 }
  0x31   :  { %233 = vmatpush.msra.mxu2 %v212_v58 }
  0x32   :  { %124 = vmatpush.msra.mxu0 %v89_v15  ;;  %179 = vmatpush.msra.mxu1 %v150_v29 }
  0x33   :  { %125 = vmatmul.f32.vlgmr.msra.gmra.mxu0 %v88_v16  ;;  %234 = vmatpush.msra.mxu2 %v211_v59 }
  0x34   :  { %180 = vmatpush.msra.mxu1 %v149_v30 }
  0x35   :  { %235 = vmatpush.msra.mxu2 %v210_v60 }
  0x36   :  { %181 = vmatpush.msra.mxu1 %v148_v31 }
  0x37   :  { %236 = vmatpush.msra.mxu2 %v209_v61 }
  0x38   :  { %182 = vmatpush.msra.mxu1 %v147_v33 }
  0x39   :  { %237 = vmatpush.msra.mxu2 %v208_v62 }
  0x3b   :  { %238 = vmatpush.msra.mxu2 %v207_v63 }
  0x3d   :  { %239 = vmatpush.msra.mxu2 %v206_v0 }
  0x3f   :  { %240 = vmatpush.msra.mxu2 %v205_v2 }
  0xb0   :  { %v126_v34 = vpop.f32.mrf.mxu0 }
  0xb1   :  { %v127_v35 = vadd.f32 %v272_v32, %v126_v34 }
  0xb3   :  { %v129_v36 = vsub.f32 0.0, %v127_v35 }
  0xb5   :  { %v130_v37 = vmul.f32 1.442695, %v129_v36 }
  0xb7   :  { %275 = vpow2.f32 %v130_v37 }
  0xbd   :  { %v276_v38 = vpop.eup %275 }
  0xbe   :  { %v132_v39 = vadd.f32 1.0, %v276_v38 }
  0xc0   :  { %277 = vrcp.f32 %v132_v39  ;;  %v144_v43 = vand.u32 2147483648, %v132_v39  ;;  %v142_v45 = vand.u32 2147483647, %v132_v39  ;;  %vm138_vm1 = vweird.f32 %v132_v39 }
  0xc2   :  { %v145_v47 = vor.u32 1.1754944e-38, %v144_v43  ;;  %vm143_vm3 = vcmp.eq.f32.partialorder %v142_v45, 8.507059e+37 }
  0xc6   :  { %v278_v40 = vpop.eup %277 }
  0xc7   :  { %v134_v41 = vmul.f32 %v278_v40, %v132_v39  ;;  %vm139_vm0 = vweird.f32 %v278_v40 }
  0xc8   :  { %vm140_vm2 = vmor %vm138_vm1, %vm139_vm0 }
  0xc9   :  { %v135_v42 = vsub.f32 1.0, %v134_v41 }
  0xcb   :  { %v136_v44 = vmul.f32 %v278_v40, %v135_v42 }
  0xcd   :  { %v137_v46 = vadd.f32 %v278_v40, %v136_v44 }
  0xcf   :  { %v141_v48 = vsel %vm140_vm2, %v278_v40, %v137_v46 }
  0xd0   :  { %v146_v49 = vsel %vm143_vm3, %v145_v47, %v141_v48 }
  0xd1   :  { %183 = vmatmul.f32.vlgmr.msra.gmra.mxu1 %v146_v49 }
 0x14e   :  { %v184_v3 = vpop.f32.mrf.mxu1 }
 0x14f   :  { %v185_v4 = vadd.f32 %v273_v1, %v184_v3 }
 0x151   :  { %v187_v5 = vsub.f32 0.0, %v185_v4 }
 0x153   :  { %v188_v6 = vmul.f32 1.442695, %v187_v5 }
 0x155   :  { %279 = vpow2.f32 %v188_v6 }
 0x15b   :  { %v280_v7 = vpop.eup %279 }
 0x15c   :  { %v190_v8 = vadd.f32 1.0, %v280_v7 }
 0x15e   :  { %281 = vrcp.f32 %v190_v8  ;;  %v202_v12 = vand.u32 2147483648, %v190_v8  ;;  %v200_v14 = vand.u32 2147483647, %v190_v8  ;;  %vm196_vm5 = vweird.f32 %v190_v8 }
 0x160   :  { %v203_v16 = vor.u32 1.1754944e-38, %v202_v12  ;;  %vm201_vm7 = vcmp.eq.f32.partialorder %v200_v14, 8.507059e+37 }
 0x164   :  { %v282_v9 = vpop.eup %281 }
 0x165   :  { %v192_v10 = vmul.f32 %v282_v9, %v190_v8  ;;  %vm197_vm4 = vweird.f32 %v282_v9 }
 0x166   :  { %vm198_vm6 = vmor %vm196_vm5, %vm197_vm4 }
 0x167   :  { %v193_v11 = vsub.f32 1.0, %v192_v10 }
 0x169   :  { %v194_v13 = vmul.f32 %v282_v9, %v193_v11 }
 0x16b   :  { %v195_v15 = vadd.f32 %v282_v9, %v194_v13 }
 0x16d   :  { %v199_v17 = vsel %vm198_vm6, %v282_v9, %v195_v15 }
 0x16e   :  { %v204_v18 = vsel %vm201_vm7, %v203_v16, %v199_v17 }
 0x16f   :  { %241 = vmatmul.f32.vlgmr.msra.gmra.mxu2 %v204_v18 }
 0x1f2   :  { %v242_v20 = vpop.f32.mrf.mxu2 }
 0x1f3   :  { %v243_v21 = vadd.f32 %v274_v19, %v242_v20 }
 0x1f5   :  { %245 = vst [vmem:[#allocation10] sm:$0xff] %v243_v21 }
 0x1f6   :  { %256 = dma.vmem_to_hbm [thread:$0]  %s252_s24, 128, %s254_s27, [#allocation4]  }
 0x1f7   :  { %409 = dma.done.wait [#allocation4], 128  }
 0x1f8   :  { %410 = vsyncadd [#allocation4], 4294967168 }
 0x1f9   :  { %261 = vsyncpa [#allocation3], 1 }
 0x1fa   :  { %262 = vsyncpa [#allocation6], 1 }
 0x1fb   :  { %263 = vsyncpa [#allocation9], 1 }
 0x1fc   :  { %264 = vsyncpa [#allocation4], 1 }

</bundles_post_ra>
